<compile_context>
chip_gen: v7x
topology: tpu7x:2x2x1
jax: 0.10.0
libtpu: 0.0.40
codegen_flags: <defaults>
</compile_context>

<pallas_src>
import jax
import jax.numpy as jnp
from jax import lax
from jax.experimental import pallas as pl
from jax.experimental.pallas import tpu as pltpu

_LANE = 128
_TARGET_TILE_BYTES = 4 << 20    # ~4 MiB of output per grid step (writeback roofline)
_VMEM_TILE_BUDGET = 16 << 20    # double-buffered output tile budget (v7x-safe)
_FAST_PATH_BYTES = 1 << 20      # below this, fused XLA broadcast beats kernel launch


def _steady_state_softmax_kernel(w_col_ref, out_ref):
    # w_col_ref : (N, 1)       float32 parameter column (resident across grid steps)
    # out_ref   : (N, TILE_M)  output tile; M is the lane axis -> lane-dense stores
    n_blk, tile_m = out_ref.shape
    w = w_col_ref[...]                                    # (N, 1)
    m = jnp.max(w, axis=0, keepdims=True)                 # (1, 1) stable max (XLU)
    e = jnp.exp(w - m)                                    # (N, 1) (EUP)
    s = jnp.sum(e, axis=0, keepdims=True)                 # (1, 1) denom (XLU)
    p_col = e / s                                         # (N, 1) softmax column

    num_chunks = tile_m // _LANE
    if num_chunks <= 1 or tile_m % _LANE != 0:
        # Tiny / irregular tile (e.g. forced path with M < 128): single store.
        out_ref[...] = jnp.broadcast_to(p_col, out_ref.shape).astype(out_ref.dtype)
    else:
        # Broadcast once into one (N, 128) slab (~N/8 vregs) and store it
        # repeatedly -> flat vreg pressure, spill-free vst stream.
        p_slab = jnp.broadcast_to(p_col, (n_blk, _LANE)).astype(out_ref.dtype)

        def store_chunk(c, carry):
            off = pl.multiple_of(c * _LANE, _LANE)
            out_ref[:, pl.ds(off, _LANE)] = p_slab
            return carry

        lax.fori_loop(0, num_chunks, store_chunk, 0, unroll=min(8, num_chunks))


def _choose_tile_m(N, M, itemsize):
    """Bytes-per-step driven lane-tile selection."""
    per_lane_bytes = N * itemsize
    max_lanes_target = max(_LANE, _TARGET_TILE_BYTES // per_lane_bytes)
    max_lanes_vmem = max(_LANE, _VMEM_TILE_BUDGET // (2 * per_lane_bytes))
    tile_m = min(M, max_lanes_target, max_lanes_vmem)
    tile_m = (tile_m // _LANE) * _LANE
    if tile_m == 0:
        return M                      # M < 128: single full-extent block
    # Guarantee >= 2 grid steps when M allows it so the "parallel" axis can
    # shard across both v7x TensorCores.
    if tile_m == M and M >= 2 * _LANE:
        tile_m = max(_LANE, (pl.cdiv(M, 2) // _LANE) * _LANE)
    return tile_m


def _forward_pallas(w32, M, *, tile_m=None, out_dtype=jnp.float32):
    """Pallas path: writes the (N, M) result directly, tiled along M."""
    N = w32.shape[0]
    itemsize = jnp.dtype(out_dtype).itemsize

    if tile_m is None:
        tile_m = _choose_tile_m(N, M, itemsize)
    else:
        # Respect user tile but keep it a multiple of 128 and <= M (never
        # silently blow it up to the full slab).
        tile_m = min(int(tile_m), M)
        if M >= _LANE:
            tile_m = max(_LANE, (tile_m // _LANE) * _LANE)
        else:
            tile_m = M

    num_tiles = int(pl.cdiv(M, tile_m))
    grid = (num_tiles,)

    w_col = w32.reshape(N, 1)

    # Scoped-VMEM limit sized to the double-buffered output tile (+ slack),
    # capped at 32 MiB (safe on v5e/v6e/v7x).
    tile_bytes = N * tile_m * itemsize
    vmem_limit = int(min(32 << 20, max(8 << 20, 2 * tile_bytes + (2 << 20))))

    cost = pl.CostEstimate(
        flops=int(3 * N * num_tiles),           # sub / add / div per elem per step
        transcendentals=int(N * num_tiles),     # exp per elem per step
        bytes_accessed=int(N * M * itemsize + N * 4),
    )

    return pl.pallas_call(
        _steady_state_softmax_kernel,
        out_shape=jax.ShapeDtypeStruct((N, M), out_dtype),
        grid=grid,
        in_specs=[pl.BlockSpec((N, 1), lambda i: (0, 0))],       # W stays resident
        out_specs=pl.BlockSpec((N, tile_m), lambda i: (0, i)),   # lane-dense tiles
        compiler_params=pltpu.CompilerParams(
            dimension_semantics=("parallel",),
            vmem_limit_bytes=vmem_limit),
        cost_estimate=cost,
    )(w_col)


def steady_state_softmax_markov_chain_forward(W, M, *, tile_m=None,
                                              out_dtype=jnp.float32,
                                              use_pallas=None):
    """Pallas equivalent of SteadyStateSoftmaxMarkovChain.forward().

    W : (N,) parameter vector.
    Returns a (N, M) array where every column equals softmax(W).
    """
    N = W.shape[0]
    w32 = W.astype(jnp.float32)
    itemsize = jnp.dtype(out_dtype).itemsize

    if use_pallas is None:
        # Bytes-based heuristic: below ~1 MiB of output the launch/step
        # overhead dominates; M < 128 would force masked partial lane stores.
        use_pallas = (N * M * itemsize >= _FAST_PATH_BYTES) and (M >= _LANE)

    if not use_pallas:
        p = jax.nn.softmax(w32, axis=0)
        return jnp.broadcast_to(p[:, None], (N, M)).astype(out_dtype)

    return _forward_pallas(w32, M, tile_m=tile_m, out_dtype=out_dtype)


if __name__ == "__main__":
    # Module hyper-parameters (small, consistent with __init__(N, M)).
    N, M = 8, 512

    # Deterministic parameter init (W ~ randn(N) in the PyTorch module).
    key = jax.random.PRNGKey(0)
    W = jax.random.normal(key, (N,), dtype=jnp.float32)

    # Pure-JAX reference of the PyTorch forward: softmax(W).repeat(M,1).T
    p_ref = jax.nn.softmax(W, axis=0)                      # (N,)

    # 1) Forced Pallas path: auto tile -> tile_m=256, grid of 2 steps, chunked stores.
    out = jax.block_until_ready(
        steady_state_softmax_markov_chain_forward(W, M, use_pallas=True))
    ref = jnp.broadcast_to(p_ref[:, None], (N, M))
    assert out.shape == (N, M)
    assert jnp.allclose(out, ref, atol=1e-6, rtol=1e-6), "mismatch vs reference"

    # 2) Forced Pallas, partial last tile (M=384 with tile_m=256 -> masked last tile).
    M2 = 384
    out2 = jax.block_until_ready(
        steady_state_softmax_markov_chain_forward(W, M2, tile_m=256, use_pallas=True))
    ref2 = jnp.broadcast_to(p_ref[:, None], (N, M2))
    assert jnp.allclose(out2, ref2, atol=1e-6, rtol=1e-6), "partial-tile mismatch"

    # 3) Auto small-shape fast path (fused XLA broadcast, no kernel launch).
    out3 = jax.block_until_ready(steady_state_softmax_markov_chain_forward(W, 16))
    ref3 = jnp.broadcast_to(p_ref[:, None], (N, 16))
    assert jnp.allclose(out3, ref3, atol=1e-6, rtol=1e-6), "fast-path mismatch"

    print("KERNEL_OK")
</pallas_src>

<mosaic_0001>
module attributes {stable_mosaic.version = 11 : i64} {
  func.func @_steady_state_softmax_kernel(%arg0: i32, %arg1: memref<8x1xf32, #tpu.memory_space<vmem>>, %arg2: memref<8x256xf32, #tpu.memory_space<vmem>>) attributes {dimension_semantics = [#tpu.dimension_semantics<parallel>], iteration_bounds = array<i64: 2>, scalar_prefetch = 0 : i64, scratch_operands = 0 : i64, tpu.core_type = #tpu.core_type<tc>, window_params = [{pipeline_mode = #tpu.pipeline_mode<synchronous>, transform_indices = @transform_0, window_bounds = array<i64: 8, 1>}, {transform_indices = @transform_1, window_bounds = array<i64: 8, 256>}]} {
    %c0 = arith.constant 0 : index
    %c0_0 = arith.constant 0 : index
    %0 = vector.load %arg1[%c0, %c0_0] : memref<8x1xf32, #tpu.memory_space<vmem>>, vector<8x1xf32>
    %cst = arith.constant dense<0xFF800000> : vector<1xf32>
    %1 = vector.multi_reduction <maximumf>, %0, %cst [0] : vector<8x1xf32> to vector<1xf32>
    %2 = vector.shape_cast %1 : vector<1xf32> to vector<1x1xf32>
    %3 = vector.broadcast %2 : vector<1x1xf32> to vector<8x1xf32>
    %4 = arith.subf %0, %3 : vector<8x1xf32>
    %5 = math.exp %4 : vector<8x1xf32>
    %cst_1 = arith.constant dense<0.000000e+00> : vector<1xf32>
    %6 = vector.multi_reduction <add>, %5, %cst_1 [0] : vector<8x1xf32> to vector<1xf32>
    %7 = vector.shape_cast %6 : vector<1xf32> to vector<1x1xf32>
    %8 = vector.broadcast %7 : vector<1x1xf32> to vector<8x1xf32>
    %9 = arith.divf %5, %8 : vector<8x1xf32>
    %10 = vector.shape_cast %9 : vector<8x1xf32> to vector<8x1xf32>
    %11 = vector.broadcast %10 : vector<8x1xf32> to vector<8x128xf32>
    %c0_i32 = arith.constant 0 : i32
    %c128_i32 = arith.constant 128 : i32
    %12 = arith.muli %c0_i32, %c128_i32 : i32
    %13 = tpu.assume_multiple %12, 128 : i32
    %c0_2 = arith.constant 0 : index
    %14 = arith.index_cast %13 : i32 to index
    %15 = vector.load %arg2[%c0_2, %14] : memref<8x256xf32, #tpu.memory_space<vmem>>, vector<8x128xf32>
    tpu.vector_store %arg2[%c0_2, %14], %11 {strides = array<i32>} : memref<8x256xf32, #tpu.memory_space<vmem>>, vector<8x128xf32>,
    %c1_i32 = arith.constant 1 : i32
    %c128_i32_3 = arith.constant 128 : i32
    %16 = arith.muli %c1_i32, %c128_i32_3 : i32
    %17 = tpu.assume_multiple %16, 128 : i32
    %c0_4 = arith.constant 0 : index
    %18 = arith.index_cast %17 : i32 to index
    %19 = vector.load %arg2[%c0_4, %18] : memref<8x256xf32, #tpu.memory_space<vmem>>, vector<8x128xf32>
    tpu.vector_store %arg2[%c0_4, %18], %11 {strides = array<i32>} : memref<8x256xf32, #tpu.memory_space<vmem>>, vector<8x128xf32>,
    %c2_i32 = arith.constant 2 : i32
    return
  }
  func.func @transform_0(%arg0: i32) -> (i32, i32) {
    %c0_i32 = arith.constant 0 : i32
    %c0_i32_0 = arith.constant 0 : i32
    %c0_i32_1 = arith.constant 0 : i32
    return %c0_i32, %c0_i32_0 : i32, i32
  }
  func.func @transform_1(%arg0: i32) -> (i32, i32) {
    %c0_i32 = arith.constant 0 : i32
    %c0_i32_0 = arith.constant 0 : i32
    return %c0_i32, %arg0 : i32, i32
  }
}

</mosaic_0001>

<bundles_post_ra>
// kernel: tpu_custom_call.1
= control target key start
LH: loop header
LB: loop body
LE: loop exit
PB: predicated region body
PF: predicated region fallthrough
CT: control target
= control target key end

     0   :  { %6 = vsyncpa [#allocation3], 0  ;;  %s417_s0 = inlined_call_operand.vmem [shape: f32[8,1], index: 0, kind: input, shape index: {}]   ;;  %s418_s1 = inlined_call_operand.hbm [shape: f32[8,512], index: 1, kind: output, shape index: {}]  }
   0x1   :  { %8 = vsyncpa [#allocation3 + $0x1], 0  ;;  %s319_s6 = smov 0   ;;  %s321_s7 = smov 0  }
   0x2   :  { %s323_s8 = smov 0   ;;  %s325_s9 = smov 0  }
   0x3 LB: > { %s186_s10 = sadd.s32 4294967295, %s305_s9   ;;  %s187_s11 = sadd.s32 4294967294, %s305_s9   ;;  %s305_s9 = sphi %s325_s9, %s424_s9   ;;  %s301_s8 = sphi %s323_s8, %s423_s8   ;;  %s297_s7 = sphi %s321_s7, %s422_s7   ;;  %s293_s6 = sphi %s319_s6, %s421_s6  }
   0x4   : > { %s342_s12 = sadd.s32 1, %s305_s9   ;;  %s42_s13 = sadd.s32 1, %s301_s8 }
   0x5   : > { %s39_s14 = ssub.s32 %s305_s9, %s342_s12  ;;  %p52_p0 = scmp.ne.s32.totalorder %s301_s8, %s297_s7 }
   0x6   : > { %p40_p1 = scmp.eq.s32.totalorder %s39_s14, 0  ;;  %p53_p2 = scmp.eq.s32.totalorder %s186_s10, 1 }
   0x7   : > { %p58_p3 = scmp.ne.s32.totalorder %s297_s7, %s293_s6  ;;  %p59_p4 = scmp.eq.s32.totalorder %s187_s11, 1 }
   0x8   : > { %s354_s15 = scalar_select %p40_p1, %s301_s8, %s42_s13  }
   0x9   : > { %p356_p5 = por %p53_p2, %p52_p0  ;;  %p360_p6 = por %p59_p4, %p58_p3 }
   0xa   : > { %p189_p7 = scmp.ge.s32.totalorder %s305_s9, 1  ;;  %p80_p8 = scmp.lt.s32.totalorder %s305_s9, 3 }
   0xc   : > { %p81_p9 = pnand %p189_p7, %p80_p8 }
   0xd   : > { %v96_v0 = vld [vmem:[%s417_s0] sm:$0xff] (!%p81_p9)  ;;  %vm97_vm0 = vcmask (!%p81_p9), 7168   ;;  %v307_v1 = vmov (!%p81_p9), 0   ;;  %s92_s20 = sand.u32 (!%p81_p9), 1, %s297_s7   ;;  %s197_s24 = sshll.u32 (!%p81_p9), %s186_s10, 8 }
   0xe   : > { %84 = sbr.rel (%p81_p9) target bundleno = 210 (0xd2), region = 24  ;;  %238 = vset.pattern.permute.xlu0 (!%p81_p9), %v307_v1  ;;  %v98_v2 = vsel (!%p81_p9), %vm97_vm0, %v96_v0, -inf  ;;  %s190_s21 = sshll.u32 (!%p81_p9), %s92_s20, 4 }
   0xf   : > { %v99_v3 = vrot.slane (!%p81_p9), %v98_v2, 4  ;;  %s94_s22 = scalar_lea.vmem (!%p81_p9), [#allocation2], %s190_s21  ;;  %s377_s27 = scalar_lea.hbm (!%p81_p9), %s418_s1, %s197_s24 }
  0x10   : > { %s140_s23 = sshll.u32 (!%p81_p9), %s94_s22, 4  ;;  %s126_s28 = scalar_lea.sflag (!%p81_p9), [#allocation3], %s92_s20  ;;  %s372_s23 = int_to_ptr.vmem [resolvable:$true] %s140_s23 }
  0x11   : > { %v100_v4 = vmax.f32 (!%p81_p9), %v98_v2, %v99_v3  ;;  %s243_s29 = scalar_lea.vmem (!%p81_p9), %s372_s23, 256  ;;  %s308_s30 = smov (!%p81_p9), [#allocation2]  }
  0x12   : > { %p244_p10 = scmp.ne.s32.totalorder (!%p81_p9), %s372_s23, %s243_s29  ;;  %s247_s2 = sshll.u32 (!%p81_p9), %s308_s30, 4  ;;  %s248_s2 = int_to_ptr.vmem [resolvable:$false] %s247_s2 }
  0x13   : > { %v101_v5 = vrot.slane (!%p81_p9), %v100_v4, 2  ;;  %s249_s3 = scalar_lea.vmem (!%p81_p9), %s248_s2, 512  ;;  %p250_p13 = scmp.lt.s32.totalorder (!%p81_p9), %s372_s23, %s248_s2 }
  0x14   : > { %p245_p11 = pnand (!%p81_p9), %p244_p10, %p356_p5  ;;  %p251_p0 = scmp.lt.s32.totalorder (!%p81_p9), %s249_s3, %s243_s29 }
  0x15   : > { %v102_v6 = vmax.f32 %v100_v4, %v101_v5 }
  0x16   : > { %p246_p12 = pneg %p245_p11  ;;  %p252_p1 = por %p251_p0, %p250_p13 }
  0x17   : > { %v103_v7 = vrot.slane %v102_v6, 1 }
  0x18   : > { %p253_p2 = pnand %p252_p1, %p246_p12 }
  0x19   : > { %v104_v8 = vmax.f32 %v102_v6, %v103_v7 }
  0x1b   : > { %v105_v9 = vsub.f32 %v96_v0, %v104_v8 }
  0x1d   : > { %v106_v10 = vmul.f32 1.442695, %v105_v9 }
  0x1f   : > { %239 = vpow2.f32 %v106_v10 }
  0x29   : > { %v240_v11 = vpop.eup %239 }
  0x2a   : > { %v108_v12 = vsel %vm97_vm0, %v240_v11, 0.0 }
  0x2b   : > { %v109_v13 = vrot.slane %v108_v12, 4 }
  0x2d   : > { %v110_v14 = vadd.f32 %v109_v13, %v108_v12 }
  0x2f   : > { %v111_v15 = vrot.slane %v110_v14, 2 }
  0x31   : > { %v112_v16 = vadd.f32 %v111_v15, %v110_v14 }
  0x33   : > { %v113_v17 = vrot.slane %v112_v16, 1 }
  0x35   : > { %v114_v18 = vadd.f32 %v113_v17, %v112_v16 }
  0x37   : > { %241 = vrcp.f32 %v114_v18 }
  0x41   : > { %v242_v19 = vpop.eup %241 }
  0x42   : > { %v116_v20 = vmul.f32 %v242_v19, %v240_v11 }
  0x44   : > { %119 = vperm.xlu0 %238, %v116_v20  }
  0xc3   : > { %v120_v21 = vpop.permute.xlu0 %119 }
  0xc4   : > { %122 = vst [vmem:[%s94_s22] sm:$0xff] %v120_v21  ;;  %191 = vst [vmem:[%s94_s22 + $0x8] sm:$0xff] %v120_v21 }
  0xc5   : > { %256 = shalt.err (!%p253_p2)
}
  0xc6   : > { %s257_s4 = scalar_lea.hbm %s377_s27, 256  ;;  %s261_s11 = scalar_lea.hbm %s418_s1, 512 }
  0xc7   : > { %p258_p3 = scmp.ne.s32.totalorder %s377_s27, %s257_s4  ;;  %p262_p8 = scmp.lt.u32.totalorder %s377_s27, %s418_s1 }
  0xc8   : > { %p263_p9 = scmp.lt.u32.totalorder %s261_s11, %s257_s4  ;;  %p265_p11 = scmp.lt.u32.totalorder %s257_s4, %s377_s27 }
  0xc9   : > { %p259_p4 = pnand %p258_p3, %p356_p5 }
  0xca   : > { %p264_p10 = por %p263_p9, %p262_p8 }
  0xcb   : > { %p260_p7 = pneg %p259_p4 }
  0xcc   : > { %p266_p12 = por %p265_p11, %p264_p10 }
  0xce   : > { %p267_p13 = pnand %p266_p12, %p260_p7 }
  0xd0   : > { %270 = shalt.err (!%p267_p13)
}
  0xd1   : > { %198 = dma.vmem_to_hbm [thread:$0]  (%p356_p5), %s372_s23, 256, %s377_s27, %s126_s28  }
  0xd2 PF: > { %p204_p0 = scmp.ge.s32.totalorder %s305_s9, 2  ;;  %s152_s18 = sand.u32 1, %s293_s6  }
  0xd3   : > { %s153_s19 = scalar_lea.sflag [#allocation3], %s152_s18 }
  0xd4   : > { %p201_p1 = pnand %p204_p0, %p360_p6 }
  0xd6   : > { %288 = dma.done.wait (!%p201_p1), %s153_s19, 256  }
  0xd7   : > { %290 = vsyncadd (!%p201_p1), %s153_s19, 4294967040  ;;  %p11_p2 = scmp.ge.s32.totalorder %s342_s12, 4   ;;  %s421_s6 = smov %s297_s7 }
  0xd8   : > { %s422_s7 = smov %s301_s8  ;;  %s423_s8 = smov %s354_s15 }
  0xd9   : > { %s424_s9 = smov %s342_s12  ;;  %13 = sbr.rel (!%p11_p2) target bundleno = 3 (0x3), region = 57 }
  0xe0   :  { %158 = vsyncpa [#allocation3], 1 }
  0xe1   :  { %160 = vsyncpa [#allocation3 + $0x1], 1 }

</bundles_post_ra>
